<compile_context>
chip_gen: v6e
topology: v6e:2x2x1
jax: 0.10.0
libtpu: 0.0.40
codegen_flags: <defaults>
</compile_context>

<pallas_src>
import functools

import jax
import jax.numpy as jnp
from jax.experimental import pallas as pl
from jax.experimental.pallas import tpu as pltpu


# ----------------------------------------------------------------------------
# Kernel
# ----------------------------------------------------------------------------
def _latent_disc_kernel(z_ref, w1_ref, b1_ref, w2_ref, b2_ref, w3_ref, b3_ref,
                        o_ref, *, bf16_layer1):
    """Fused z -> Linear -> ReLU -> Linear -> ReLU -> Linear(1) -> Sigmoid."""
    if bf16_layer1:
        # v6e/v7x: bf16 VALU available -> keep the whole layer-1 epilogue in
        # bf16 (K is tiny so bf16 accumulation is fine); halves h1 traffic.
        h1 = jnp.dot(z_ref[...], w1_ref[...],
                     preferred_element_type=jnp.bfloat16)
        h1 = jnp.maximum(h1 + b1_ref[...], 0.0)                    # bf16 bias/ReLU
    else:
        # v5e: no bf16 VALU -> f32 epilogue, then cast once for the next matmul.
        h1 = jnp.dot(z_ref[...], w1_ref[...],
                     preferred_element_type=jnp.float32)
        h1 = jnp.maximum(h1 + b1_ref[...], 0.0).astype(jnp.bfloat16)

    # Layer 2: Linear(N -> N) + ReLU   (bf16 MXU inputs, f32 accumulation)
    h2 = jnp.dot(h1, w2_ref[...], preferred_element_type=jnp.float32)
    h2 = jnp.maximum(h2 + b2_ref[...], 0.0)

    # Layer 3: Linear(N -> 1) as VPU multiply + cross-lane (XLU) sum against
    # w3 presented as a [1, N] row (MXU would waste the systolic array here).
    logits = jnp.sum(h2 * w3_ref[...], axis=-1) + b3_ref[0, 0]     # [tile_b]
    logits = logits.reshape(o_ref.shape)                            # lane-dense slab
    # sigmoid = 1 / (1 + exp(-x)): exp and approx reciprocal both ride the EUP.
    out = pl.reciprocal(1.0 + jnp.exp(-logits), approx=True)
    o_ref[...] = out.astype(o_ref.dtype)


# ----------------------------------------------------------------------------
# Wrapper
# ----------------------------------------------------------------------------
def _use_bf16_layer1():
    """bf16 VALU exists on v6e / v7x; otherwise keep the f32 layer-1 epilogue."""
    try:
        kind = jax.devices()[0].device_kind.lower()
    except Exception:
        return False
    return any(tag in kind for tag in ("v6", "v7", "7x"))


def _vmem_budget_bytes(tile_b, zp, Np, bf16_l1):
    """Rough VMEM live-set estimate used to pick tile_b / vmem_limit_bytes."""
    z_bufs = 2 * tile_b * max(zp, 128) * 2        # z tile: minor dim lane-padded to 128, x2 buffers
    out_bufs = 2 * tile_b * 4                     # (sub,128) f32 output slab, x2 buffers
    w_bufs = 2 * (max(zp, 8) * Np * 2 + Np * Np * 2 + 3 * Np * 4 + 512)
    h1 = tile_b * Np * (2 if bf16_l1 else 6)      # f32 path also keeps a bf16 copy
    h2 = 2 * tile_b * Np * 4                      # h2 + elementwise temp for the w3 head
    return z_bufs + out_bufs + w_bufs + h1 + h2


_VMEM_CAP_BYTES = 40 << 20   # conservative: fits v7x's 64 MiB physical with headroom


def latent_discriminator(z, params, *, tile_b=4096):
    """z: [B, z_size] float32 -> [B, 1] float32 (sigmoid output)."""
    w1, b1, w2, b2, w3, b3 = params
    B, z_size = z.shape
    N = w1.shape[1]
    assert tile_b % 1024 == 0 and tile_b >= 1024

    bf16_l1 = _use_bf16_layer1()

    # ---- pad hidden width to a multiple of 128 (zero pads are exact) -------
    Np = 128 * pl.cdiv(N, 128)
    b1 = jnp.asarray(b1).reshape(-1)
    b2 = jnp.asarray(b2).reshape(-1)
    w3v = jnp.asarray(w3).reshape(-1)
    if Np != N:
        w1 = jnp.pad(w1, ((0, 0), (0, Np - N)))
        b1 = jnp.pad(b1, (0, Np - N))
        w2 = jnp.pad(w2, ((0, Np - N), (0, Np - N)))
        b2 = jnp.pad(b2, (0, Np - N))
        w3v = jnp.pad(w3v, (0, Np - N))

    # ---- pad the contraction dim (e.g. 7 -> 8) for clean (8,128) tiling ----
    zp = 8 * pl.cdiv(z_size, 8)
    if zp != z_size:
        z = jnp.pad(z, ((0, 0), (0, zp - z_size)))
        w1 = jnp.pad(w1, ((0, zp - z_size), (0, 0)))

    # ---- choose the batch tile ----------------------------------------------
    Brows = 128 * pl.cdiv(B, 128)
    tile_b = min(tile_b, Brows)                       # small-batch clamp
    if Brows >= 2048 and tile_b >= Brows:
        tile_b = Brows // 2                           # keep >=2 grid steps (v7x megacore)
    if tile_b < Brows:
        tile_b = max(1024, 1024 * (tile_b // 1024))   # multi-tile: sub % 8 == 0
    # Shrink the tile if the VMEM live set would overshoot the conservative cap.
    while (_vmem_budget_bytes(tile_b, zp, Np, bf16_l1) > _VMEM_CAP_BYTES
           and tile_b >= 2048):
        tile_b = max(1024, 1024 * ((tile_b // 2) // 1024))

    n_tiles = pl.cdiv(B, tile_b)
    Bp = n_tiles * tile_b
    sub = tile_b // 128
    assert tile_b % 128 == 0
    assert n_tiles == 1 or sub % 8 == 0

    if Bp != B:
        z = jnp.pad(z, ((0, Bp - B), (0, 0)))

    # ---- dtypes --------------------------------------------------------------
    z_bf = z.astype(jnp.bfloat16)
    w1_bf = w1.astype(jnp.bfloat16)
    w2_bf = w2.astype(jnp.bfloat16)
    b1_r = b1.reshape(1, Np).astype(jnp.bfloat16 if bf16_l1 else jnp.float32)
    b2_r = b2.reshape(1, Np).astype(jnp.float32)
    w3_r = w3v.reshape(1, Np).astype(jnp.float32)     # [N,1] -> [1,N] lane row
    b3_r = jnp.asarray(b3).reshape(1, 1).astype(jnp.float32)

    vmem_need = int(1.25 * _vmem_budget_bytes(tile_b, zp, Np, bf16_l1))
    vmem_limit = int(min(max(vmem_need, 32 << 20), 64 << 20))

    cost = pl.CostEstimate(
        flops=2 * Bp * (zp * Np + Np * Np + Np),
        transcendentals=2 * Bp,
        bytes_accessed=int(Bp * (zp * 2 + 4)
                           + (zp * Np + Np * Np) * 2 + 3 * Np * 4 + 4),
    )

    kernel = functools.partial(_latent_disc_kernel, bf16_layer1=bf16_l1)

    out = pl.pallas_call(
        kernel,
        out_shape=jax.ShapeDtypeStruct((n_tiles * sub, 128), jnp.float32),
        grid=(n_tiles,),
        in_specs=[
            # streamed batch tile of z
            pl.BlockSpec((tile_b, zp), lambda i: (i, 0)),
            # weights / biases: constant index_map -> VMEM-resident across steps
            pl.BlockSpec((zp, Np), lambda i: (0, 0)),
            pl.BlockSpec((1, Np), lambda i: (0, 0)),
            pl.BlockSpec((Np, Np), lambda i: (0, 0)),
            pl.BlockSpec((1, Np), lambda i: (0, 0)),
            pl.BlockSpec((1, Np), lambda i: (0, 0)),
            # scalar bias of the final layer lives in SMEM
            pl.BlockSpec((1, 1), lambda i: (0, 0),
                         memory_space=pltpu.MemorySpace.SMEM),
        ],
        out_specs=pl.BlockSpec((sub, 128), lambda i: (i, 0)),
        compiler_params=pltpu.CompilerParams(
            dimension_semantics=("parallel",),
            vmem_limit_bytes=vmem_limit,
        ),
        cost_estimate=cost,
    )(z_bf, w1_bf, b1_r, w2_bf, b2_r, w3_r, b3_r)

    return out.reshape(Bp, 1)[:B]


# ----------------------------------------------------------------------------
# Reference + test
# ----------------------------------------------------------------------------
def init_params(key, z_size=7, N=128):
    """Deterministic synthetic parameters (weights stored as [in, out] == torch weight.T)."""
    k1, k2, k3, k4, k5, k6 = jax.random.split(key, 6)
    w1 = jax.random.normal(k1, (z_size, N), jnp.float32) * 0.1
    b1 = jax.random.normal(k2, (N,), jnp.float32) * 0.01
    w2 = jax.random.normal(k3, (N, N), jnp.float32) * 0.1
    b2 = jax.random.normal(k4, (N,), jnp.float32) * 0.01
    w3 = jax.random.normal(k5, (N, 1), jnp.float32) * 0.1
    b3 = jax.random.normal(k6, (1,), jnp.float32) * 0.01
    return (w1, b1, w2, b2, w3, b3)


def reference(z, params):
    w1, b1, w2, b2, w3, b3 = params
    h1 = jnp.maximum(z @ w1 + b1.reshape(1, -1), 0.0)
    h2 = jnp.maximum(h1 @ w2 + b2.reshape(1, -1), 0.0)
    return jax.nn.sigmoid(h2 @ w3 + b3.reshape(1, 1))


if __name__ == "__main__":
    key = jax.random.PRNGKey(0)
    kz1, kz2, kp1, kp2 = jax.random.split(key, 4)

    # Case 1: tiny batch, hidden width already a multiple of 128.
    B1, zs1, N1 = 8, 7, 128
    z1 = jax.random.normal(kz1, (B1, zs1), jnp.float32)
    p1 = init_params(kp1, z_size=zs1, N=N1)
    o1 = jax.block_until_ready(latent_discriminator(z1, p1))
    r1 = reference(z1, p1)
    assert o1.shape == (B1, 1)
    # bf16 MXU inputs + approx reciprocal -> slightly loose tolerance vs f32 ref
    assert jnp.allclose(o1, r1, atol=2e-2, rtol=2e-2), "case 1 mismatch vs reference"

    # Case 2: ragged batch + hidden width not a multiple of 128 (padded inside).
    B2, zs2, N2 = 300, 7, 200
    z2 = jax.random.normal(kz2, (B2, zs2), jnp.float32)
    p2 = init_params(kp2, z_size=zs2, N=N2)
    o2 = jax.block_until_ready(latent_discriminator(z2, p2))
    r2 = reference(z2, p2)
    assert o2.shape == (B2, 1)
    assert jnp.allclose(o2, r2, atol=2e-2, rtol=2e-2), "case 2 mismatch vs reference"

    print("KERNEL_OK")
</pallas_src>

<mosaic_0001>
module attributes {stable_mosaic.version = 11 : i64} {
  func.func @_latent_disc_kernel(%arg0: i32, %arg1: memref<128x8xbf16, #tpu.memory_space<vmem>>, %arg2: memref<8x128xbf16, #tpu.memory_space<vmem>>, %arg3: memref<1x128xf32, #tpu.memory_space<vmem>>, %arg4: memref<128x128xbf16, #tpu.memory_space<vmem>>, %arg5: memref<1x128xf32, #tpu.memory_space<vmem>>, %arg6: memref<1x128xf32, #tpu.memory_space<vmem>>, %arg7: memref<1x1xf32, #tpu.memory_space<smem>>, %arg8: memref<1x128xf32, #tpu.memory_space<vmem>>) attributes {dimension_semantics = [#tpu.dimension_semantics<parallel>], iteration_bounds = array<i64: 1>, scalar_prefetch = 0 : i64, scratch_operands = 0 : i64, tpu.core_type = #tpu.core_type<tc>, window_params = [{transform_indices = @transform_0, window_bounds = array<i64: 128, 8>}, {pipeline_mode = #tpu.pipeline_mode<synchronous>, transform_indices = @transform_1, window_bounds = array<i64: 8, 128>}, {pipeline_mode = #tpu.pipeline_mode<synchronous>, transform_indices = @transform_2, window_bounds = array<i64: 1, 128>}, {pipeline_mode = #tpu.pipeline_mode<synchronous>, transform_indices = @transform_3, window_bounds = array<i64: 128, 128>}, {pipeline_mode = #tpu.pipeline_mode<synchronous>, transform_indices = @transform_4, window_bounds = array<i64: 1, 128>}, {pipeline_mode = #tpu.pipeline_mode<synchronous>, transform_indices = @transform_5, window_bounds = array<i64: 1, 128>}, {transform_indices = @transform_6, window_bounds = array<i64: 1, 1>}, {transform_indices = @transform_7, window_bounds = array<i64: 1, 128>}]} {
    %c0 = arith.constant 0 : index
    %c0_0 = arith.constant 0 : index
    %0 = vector.load %arg1[%c0, %c0_0] : memref<128x8xbf16, #tpu.memory_space<vmem>>, vector<128x8xbf16>
    %c0_1 = arith.constant 0 : index
    %c0_2 = arith.constant 0 : index
    %1 = vector.load %arg2[%c0_1, %c0_2] : memref<8x128xbf16, #tpu.memory_space<vmem>>, vector<8x128xbf16>
    %cst = arith.constant dense<0.000000e+00> : vector<128x128xf32>
    %2 = tpu.matmul %0, %1, %cst {dimension_numbers = #tpu.dot_dimension_numbers<[1], [0], [0], [1], [0, 0, 1, 1], [], []>} : vector<128x8xbf16>, vector<8x128xbf16>, vector<128x128xf32> -> vector<128x128xf32>
    %c0_3 = arith.constant 0 : index
    %c0_4 = arith.constant 0 : index
    %3 = vector.load %arg3[%c0_3, %c0_4] : memref<1x128xf32, #tpu.memory_space<vmem>>, vector<1x128xf32>
    %4 = vector.broadcast %3 : vector<1x128xf32> to vector<128x128xf32>
    %5 = arith.addf %2, %4 : vector<128x128xf32>
    %cst_5 = arith.constant 0.000000e+00 : f32
    %6 = vector.broadcast %cst_5 : f32 to vector<128x128xf32>
    %7 = arith.maximumf %5, %6 : vector<128x128xf32>
    %8 = arith.truncf %7 : vector<128x128xf32> to vector<128x128xbf16>
    %c0_6 = arith.constant 0 : index
    %c0_7 = arith.constant 0 : index
    %9 = vector.load %arg4[%c0_6, %c0_7] : memref<128x128xbf16, #tpu.memory_space<vmem>>, vector<128x128xbf16>
    %cst_8 = arith.constant dense<0.000000e+00> : vector<128x128xf32>
    %10 = tpu.matmul %8, %9, %cst_8 {dimension_numbers = #tpu.dot_dimension_numbers<[1], [0], [0], [1], [0, 0, 1, 1], [], []>} : vector<128x128xbf16>, vector<128x128xbf16>, vector<128x128xf32> -> vector<128x128xf32>
    %c0_9 = arith.constant 0 : index
    %c0_10 = arith.constant 0 : index
    %11 = vector.load %arg5[%c0_9, %c0_10] : memref<1x128xf32, #tpu.memory_space<vmem>>, vector<1x128xf32>
    %12 = vector.broadcast %11 : vector<1x128xf32> to vector<128x128xf32>
    %13 = arith.addf %10, %12 : vector<128x128xf32>
    %cst_11 = arith.constant 0.000000e+00 : f32
    %14 = vector.broadcast %cst_11 : f32 to vector<128x128xf32>
    %15 = arith.maximumf %13, %14 : vector<128x128xf32>
    %c0_12 = arith.constant 0 : index
    %c0_13 = arith.constant 0 : index
    %16 = vector.load %arg6[%c0_12, %c0_13] : memref<1x128xf32, #tpu.memory_space<vmem>>, vector<1x128xf32>
    %17 = vector.broadcast %16 : vector<1x128xf32> to vector<128x128xf32>
    %18 = arith.mulf %15, %17 : vector<128x128xf32>
    %cst_14 = arith.constant dense<0.000000e+00> : vector<128xf32>
    %19 = vector.multi_reduction <add>, %18, %cst_14 [1] : vector<128x128xf32> to vector<128xf32>
    %c0_15 = arith.constant 0 : index
    %c0_16 = arith.constant 0 : index
    %20 = memref.load %arg7[%c0_15, %c0_16] : memref<1x1xf32, #tpu.memory_space<smem>>
    %21 = vector.broadcast %20 : f32 to vector<128xf32>
    %22 = arith.addf %19, %21 : vector<128xf32>
    %23 = vector.shape_cast %22 : vector<128xf32> to vector<1x128xf32>
    %cst_17 = arith.constant 0.000000e+00 : f32
    %24 = vector.broadcast %cst_17 : f32 to vector<1x128xf32>
    %25 = arith.subf %24, %23 : vector<1x128xf32>
    %26 = math.exp %25 : vector<1x128xf32>
    %cst_18 = arith.constant 1.000000e+00 : f32
    %27 = vector.broadcast %cst_18 : f32 to vector<1x128xf32>
    %28 = arith.addf %27, %26 : vector<1x128xf32>
    %29 = tpu.reciprocal %28 {approx = true} : vector<1x128xf32> -> vector<1x128xf32>
    %c0_19 = arith.constant 0 : index
    %c0_20 = arith.constant 0 : index
    %30 = vector.load %arg8[%c0_19, %c0_20] : memref<1x128xf32, #tpu.memory_space<vmem>>, vector<1x128xf32>
    tpu.vector_store %arg8[%c0_19, %c0_20], %29 {strides = array<i32>} : memref<1x128xf32, #tpu.memory_space<vmem>>, vector<1x128xf32>,
    return
  }
  func.func @transform_0(%arg0: i32) -> (i32, i32) {
    %c0_i32 = arith.constant 0 : i32
    %c0_i32_0 = arith.constant 0 : i32
    return %arg0, %c0_i32 : i32, i32
  }
  func.func @transform_1(%arg0: i32) -> (i32, i32) {
    %c0_i32 = arith.constant 0 : i32
    %c0_i32_0 = arith.constant 0 : i32
    %c0_i32_1 = arith.constant 0 : i32
    return %c0_i32, %c0_i32_0 : i32, i32
  }
  func.func @transform_2(%arg0: i32) -> (i32, i32) {
    %c0_i32 = arith.constant 0 : i32
    %c0_i32_0 = arith.constant 0 : i32
    %c0_i32_1 = arith.constant 0 : i32
    return %c0_i32, %c0_i32_0 : i32, i32
  }
  func.func @transform_3(%arg0: i32) -> (i32, i32) {
    %c0_i32 = arith.constant 0 : i32
    %c0_i32_0 = arith.constant 0 : i32
    %c0_i32_1 = arith.constant 0 : i32
    return %c0_i32, %c0_i32_0 : i32, i32
  }
  func.func @transform_4(%arg0: i32) -> (i32, i32) {
    %c0_i32 = arith.constant 0 : i32
    %c0_i32_0 = arith.constant 0 : i32
    %c0_i32_1 = arith.constant 0 : i32
    return %c0_i32, %c0_i32_0 : i32, i32
  }
  func.func @transform_5(%arg0: i32) -> (i32, i32) {
    %c0_i32 = arith.constant 0 : i32
    %c0_i32_0 = arith.constant 0 : i32
    %c0_i32_1 = arith.constant 0 : i32
    return %c0_i32, %c0_i32_0 : i32, i32
  }
  func.func @transform_6(%arg0: i32) -> (i32, i32) {
    %c0_i32 = arith.constant 0 : i32
    %c0_i32_0 = arith.constant 0 : i32
    %c0_i32_1 = arith.constant 0 : i32
    return %c0_i32, %c0_i32_0 : i32, i32
  }
  func.func @transform_7(%arg0: i32) -> (i32, i32) {
    %c0_i32 = arith.constant 0 : i32
    %c0_i32_0 = arith.constant 0 : i32
    return %arg0, %c0_i32 : i32, i32
  }
}

</mosaic_0001>

<bundles_post_ra>
// kernel: tpu_custom_call.1
= control target key start
LH: loop header
LB: loop body
LE: loop exit
PB: predicated region body
PF: predicated region fallthrough
CT: control target
= control target key end

     0   :  { %vm118_vm0 = vcmask 1043456   ;;  %vm93_vm1 = vcmask 64512   ;;  %s1150_s0 = inlined_call_operand.vmem [shape: bf16[128,8], index: 0, kind: input, shape index: {}]   ;;  %s1151_s1 = inlined_call_operand.vmem [shape: bf16[8,128], index: 1, kind: input, shape index: {}]   ;;  %s1152_s2 = inlined_call_operand.vmem [shape: f32[1,128], index: 2, kind: input, shape index: {}]   ;;  %s1153_s3 = inlined_call_operand.vmem [shape: bf16[128,128], index: 3, kind: input, shape index: {}]   ;;  %s1154_s4 = inlined_call_operand.vmem [shape: f32[1,128], index: 4, kind: input, shape index: {}]   ;;  %s1155_s5 = inlined_call_operand.vmem [shape: f32[1,128], index: 5, kind: input, shape index: {}]   ;;  %s1156_s6 = inlined_call_operand.<no memory space> [shape: f32[1,1], index: 6, kind: input, shape index: {}]   ;;  %s1157_s7 = inlined_call_operand.hbm [shape: f32[1,128], index: 7, kind: output, shape index: {}]  }
   0x1   :  { %v45_v0 = vld [vmem:[%s1151_s1] sm:$0xf]  ;;  %v844_v3 = vld [vmem:[%s1150_s0 + $0x8] sm:$0xff]   ;;  %v845_v4 = vld [vmem:[%s1150_s0 + $0x10] sm:$0xff]  }
   0x2   :  { %v843_v1 = vld [vmem:[%s1150_s0] sm:$0xff]   ;;  %841 = vmatprep.subr.msk.bf16.mxu0 %vm118_vm0, %v45_v0  ;;  %v120_v2 = vsel %vm118_vm0, %v45_v0, 0  ;;  %v846_v5 = vld [vmem:[%s1150_s0 + $0x18] sm:$0xff]   ;;  %v852_v8 = vld [vmem:[%s1153_s3 + $0x30] sm:$0xff]  }
   0x3   :  { %776 = vmatpush3.bf16.msra.mxu0 %v120_v2  ;;  %777 = vmatprep.mubr.msk.bf16.mxu0 %vm93_vm1, %v843_v1  ;;  %v847_v6 = vld [vmem:[%s1150_s0 + $0x20] sm:$0xff]   ;;  %v851_v7 = vld [vmem:[%s1153_s3 + $0x38] sm:$0xff]   ;;  %v853_v9 = vld [vmem:[%s1153_s3 + $0x28] sm:$0xff]  }
   0x4   :  { %793 = vmatprep.subr.bf16.mxu0 %v851_v7  ;;  %825 = vmatprep.subr.bf16.mxu1 %v851_v7 }
   0x5   :  { %833 = vmatpush3.bf16.msra.mxu1 %v851_v7 }
   0x6   :  { %778 = vmatmul.mubr.msk.bf16.vlgmr.msra.gmra.mxu0 %vm93_vm1, %v844_v3  ;;  %826 = vmatprep.subr.bf16.mxu1 %v852_v8 }
   0x7   :  { %781 = vmatprep.mubr.msk.bf16.mxu0 %vm93_vm1, %v845_v4  ;;  %794 = vmatpush3.bf16.msra.mxu0 %v851_v7 }
   0x8   :  { %795 = vmatprep.subr.bf16.mxu0 %v852_v8 }
   0xe   :  { %782 = vmatmul.mubr.msk.bf16.gmra.mxu0 %vm93_vm1, %v846_v5 }
   0xf   :  { %785 = vmatprep.mubr.msk.bf16.mxu0 %vm93_vm1, %v847_v6 }
  0x10   :  { %13 = vsyncpa [#allocation4], 0  ;;  %796 = vmatpush3.bf16.msra.mxu0 %v852_v8  ;;  %834 = vmatpush3.bf16.msra.mxu1 %v852_v8  ;;  %v848_v10 = vld [vmem:[%s1150_s0 + $0x28] sm:$0xff]   ;;  %v854_v11 = vld [vmem:[%s1153_s3 + $0x20] sm:$0xff]   ;;  %vm607_vm2 = vcmask 130112   ;;  %vm614_vm3 = vcmask 195712  }
  0x11   :  { %797 = vmatprep.subr.bf16.mxu0 %v853_v9  ;;  %827 = vmatprep.subr.bf16.mxu1 %v853_v9  ;;  %v849_v12 = vld [vmem:[%s1150_s0 + $0x30] sm:$0xff]   ;;  %v855_v13 = vld [vmem:[%s1153_s3 + $0x18] sm:$0xff]   ;;  %v857_v16 = vld [vmem:[%s1153_s3 + $0x8] sm:$0xff]   ;;  %vm621_vm4 = vcmask 261312   ;;  %vm628_vm5 = vcmask 326912   ;;  %vm635_vm6 = vcmask 392512  }
  0x12   :  { %v850_v14 = vld [vmem:[%s1150_s0 + $0x38] sm:$0xff]   ;;  %v856_v15 = vld [vmem:[%s1153_s3 + $0x10] sm:$0xff]   ;;  %v858_v17 = vld [vmem:[%s1153_s3] sm:$0xff]   ;;  %vm642_vm7 = vcmask 458112   ;;  %vm649_vm8 = vcmask 523712   ;;  %vm656_vm9 = vcmask 589312  }
  0x13   :  { %v723_v20 = vld [vmem:[%s1152_s2] ss:$0 sm:$0xff]  ;;  %vm663_vm10 = vcmask 654912   ;;  %vm670_vm11 = vcmask 720512   ;;  %vm677_vm12 = vcmask 786112   ;;  %vm684_vm13 = vcmask 851712  }
  0x14   :  { %798 = vmatpush3.bf16.msra.mxu0 %v853_v9  ;;  %835 = vmatpush3.bf16.msra.mxu1 %v853_v9  ;;  %vm691_vm14 = vcmask 917312   ;;  %vm698_vm15 = vcmask 982912   ;;  %vm705_vm0 = vcmask 1048512  }
  0x15   :  { %799 = vmatprep.subr.bf16.mxu0 %v854_v11  ;;  %828 = vmatprep.subr.bf16.mxu1 %v854_v11 }
  0x16   :  { %786 = vmatmul.mubr.msk.bf16.gmra.mxu0 %vm93_vm1, %v848_v10 }
  0x17   :  { %789 = vmatprep.mubr.msk.bf16.mxu0 %vm93_vm1, %v849_v12 }
  0x18   :  { %800 = vmatpush3.bf16.msra.mxu0 %v854_v11  ;;  %836 = vmatpush3.bf16.msra.mxu1 %v854_v11  ;;  %v1051_v11 = vld [vmem:[%s1154_s4] ss:$0 sm:$0xff] }
  0x19   :  { %801 = vmatprep.subr.bf16.mxu0 %v855_v13  ;;  %829 = vmatprep.subr.bf16.mxu1 %v855_v13 }
  0x1c   :  { %802 = vmatpush3.bf16.msra.mxu0 %v855_v13  ;;  %837 = vmatpush3.bf16.msra.mxu1 %v855_v13 }
  0x1d   :  { %803 = vmatprep.subr.bf16.mxu0 %v856_v15  ;;  %830 = vmatprep.subr.bf16.mxu1 %v856_v15 }
  0x1e   :  { %790 = vmatmul.mubr.msk.bf16.gmra.mxu0 %vm93_vm1, %v850_v14 }
  0x20   :  { %804 = vmatpush3.bf16.msra.mxu0 %v856_v15  ;;  %838 = vmatpush3.bf16.msra.mxu1 %v856_v15  ;;  %v1057_v15 = vld [vmem:[%s1155_s5] ss:$0 sm:$0xff] }
  0x21   :  { %805 = vmatprep.subr.bf16.mxu0 %v857_v16  ;;  %831 = vmatprep.subr.bf16.mxu1 %v857_v16 }
  0x24   :  { %806 = vmatpush3.bf16.msra.mxu0 %v857_v16  ;;  %839 = vmatpush3.bf16.msra.mxu1 %v857_v16 }
  0x25   :  { %807 = vmatprep.subr.bf16.mxu0 %v858_v17  ;;  %832 = vmatprep.subr.bf16.mxu1 %v858_v17 }
  0x28   :  { %808 = vmatpush3.bf16.msra.mxu0 %v858_v17  ;;  %840 = vmatpush3.bf16.msra.mxu1 %v858_v17 }
  0xc6   :  { %v779_v18 = vpop.f32.mrf.mxu0 }
  0xc7   :  { %v165_v24 = vadd.f32 %v779_v18, %v723_v20 }
  0xc8   :  { %v156_v19 = vpop.f32.mrf.mxu0 }
  0xc9   :  { %v157_v22 = vadd.f32 %v723_v20, %v156_v19  ;;  %v221_v31 = vmax.f32 %v165_v24, 0.0 }
  0xca   :  { %v780_v21 = vpop.f32.mrf.mxu0 }
  0xcb   :  { %v168_v23 = vadd.f32 %v780_v21, %v723_v20  ;;  %v219_v29 = vmax.f32 %v157_v22, 0.0 }
  0xcc   :  { %v159_v25 = vpop.f32.mrf.mxu0 }
  0xcd   :  { %v160_v26 = vadd.f32 %v723_v20, %v159_v25  ;;  %v222_v27 = vmax.f32 %v168_v23, 0.0 }
  0xce   :  { %v783_v28 = vpop.f32.mrf.mxu0 }
  0xcf   :  { %v220_v30 = vmax.f32 %v160_v26, 0.0  ;;  %v236_v34 = vpack.c.bf16 %v222_v27, %v221_v31  ;;  %v181_v38 = vadd.f32 %v783_v28, %v723_v20 }
  0xd0   :  { %v172_v32 = vpop.f32.mrf.mxu0 }
  0xd1   :  { %v235_v33 = vpack.c.bf16 %v220_v30, %v219_v29  ;;  %v173_v36 = vadd.f32 %v723_v20, %v172_v32  ;;  %v225_v45 = vmax.f32 %v181_v38, 0.0 }
  0xd2   :  { %v784_v35 = vpop.f32.mrf.mxu0 }
  0xd3   :  { %v184_v37 = vadd.f32 %v784_v35, %v723_v20  ;;  %809 = vmatprep.mubr.bf16.mxu0 %v235_v33  ;;  %v223_v43 = vmax.f32 %v173_v36, 0.0 }
  0xd4   :  { %v175_v39 = vpop.f32.mrf.mxu0  ;;  %810 = vmatmul.mubr.bf16.vlgmr.msra.gmra.mxu0 %v236_v34 }
  0xd5   :  { %v176_v40 = vadd.f32 %v723_v20, %v175_v39  ;;  %v226_v41 = vmax.f32 %v184_v37, 0.0 }
  0xd6   :  { %v787_v42 = vpop.f32.mrf.mxu0 }
  0xd7   :  { %v224_v44 = vmax.f32 %v176_v40, 0.0  ;;  %v238_v48 = vpack.c.bf16 %v226_v41, %v225_v45  ;;  %v197_v52 = vadd.f32 %v787_v42, %v723_v20 }
  0xd8   :  { %v188_v46 = vpop.f32.mrf.mxu0 }
  0xd9   :  { %v237_v47 = vpack.c.bf16 %v224_v44, %v223_v43  ;;  %v189_v50 = vadd.f32 %v723_v20, %v188_v46  ;;  %v229_v59 = vmax.f32 %v197_v52, 0.0 }
  0xda   :  { %v788_v49 = vpop.f32.mrf.mxu0 }
  0xdb   :  { %v200_v51 = vadd.f32 %v788_v49, %v723_v20  ;;  %813 = vmatprep.mubr.bf16.mxu1 %v237_v47  ;;  %v227_v57 = vmax.f32 %v189_v50, 0.0 }
  0xdc   :  { %v191_v53 = vpop.f32.mrf.mxu0  ;;  %814 = vmatmul.mubr.bf16.vlgmr.msra.gmra.mxu1 %v238_v48 }
  0xdd   :  { %v192_v54 = vadd.f32 %v723_v20, %v191_v53  ;;  %v230_v55 = vmax.f32 %v200_v51, 0.0 }
  0xde   :  { %v791_v56 = vpop.f32.mrf.mxu0 }
  0xdf   :  { %v228_v58 = vmax.f32 %v192_v54, 0.0  ;;  %v240_v62 = vpack.c.bf16 %v230_v55, %v229_v59  ;;  %v213_v2 = vadd.f32 %v791_v56, %v723_v20 }
  0xe0   :  { %v204_v60 = vpop.f32.mrf.mxu0 }
  0xe1   :  { %v239_v61 = vpack.c.bf16 %v228_v58, %v227_v57  ;;  %v205_v0 = vadd.f32 %v723_v20, %v204_v60  ;;  %v233_v8 = vmax.f32 %v213_v2, 0.0 }
  0xe2   :  { %v792_v63 = vpop.f32.mrf.mxu0 }
  0xe3   :  { %v216_v1 = vadd.f32 %v792_v63, %v723_v20  ;;  %817 = vmatprep.mubr.bf16.mxu1 %v239_v61  ;;  %v231_v6 = vmax.f32 %v205_v0, 0.0 }
  0xe4   :  { %v207_v3 = vpop.f32.mrf.mxu0  ;;  %818 = vmatmul.mubr.bf16.gmra.mxu1 %v240_v62 }
  0xe5   :  { %v208_v4 = vadd.f32 %v723_v20, %v207_v3  ;;  %v234_v5 = vmax.f32 %v216_v1, 0.0 }
  0xe7   :  { %v232_v7 = vmax.f32 %v208_v4, 0.0  ;;  %v242_v10 = vpack.c.bf16 %v234_v5, %v233_v8 }
  0xe9   :  { %v241_v9 = vpack.c.bf16 %v232_v7, %v231_v6 }
  0xeb   :  { %821 = vmatprep.mubr.bf16.mxu1 %v241_v9 }
  0xec   :  { %822 = vmatmul.mubr.bf16.gmra.mxu1 %v242_v10 }
 0x194   :  { %v811_v12 = vpop.f32.mrf.mxu0 }
 0x195   :  { %v357_v13 = vadd.f32 %v811_v12, %v1051_v11 }
 0x196   :  { %v348_v14 = vpop.f32.mrf.mxu0 }
 0x197   :  { %v413_v16 = vmax.f32 %v357_v13, 0.0  ;;  %v349_v17 = vadd.f32 %v1051_v11, %v348_v14  ;;  %v1093_v14 = vstv %s1156_s6  ;;  %s945_s6 = smov [#allocation3]  }
 0x198   :  { %v812_v18 = vpop.f32.mrf.mxu0  ;;  %s715_s13 = sshll.u32 %s945_s6, 4  ;;  %s716_s13 = int_to_ptr.vmem [resolvable:$true] %s715_s13 }
 0x199   :  { %v411_v19 = vmax.f32 %v349_v17, 0.0  ;;  %v360_v20 = vadd.f32 %v812_v18, %v1051_v11  ;;  %v436_v21 = vmul.f32 %v1057_v15, %v413_v16  ;;  %s923_s14 = scalar_lea.vmem %s716_s13, 16  ;;  %s927_s15 = scalar_lea.vmem %s716_s13, 32 }
 0x19a   :  { %v351_v22 = vpop.f32.mrf.mxu0  ;;  %p924_p0 = scmp.ne.s32.totalorder %s716_s13, %s923_s14  ;;  %p928_p1 = scmp.lt.s32.totalorder %s716_s13, %s716_s13 }
 0x19b   :  { %v414_v23 = vmax.f32 %v360_v20, 0.0  ;;  %v352_v24 = vadd.f32 %v1051_v11, %v351_v22  ;;  %454 = vadd.xlane.f32.xlu1 %v436_v21  ;;  %v434_v25 = vmul.f32 %v1057_v15, %v411_v19  ;;  %p929_p2 = scmp.lt.s32.totalorder %s927_s15, %s923_s14 }
 0x19c   :  { %v815_v26 = vpop.f32.mrf.mxu1 }
 0x19d   :  { %v412_v27 = vmax.f32 %v352_v24, 0.0  ;;  %v373_v28 = vadd.f32 %v815_v26, %v1051_v11  ;;  %450 = vadd.xlane.f32.xlu0 %v434_v25  ;;  %v437_v29 = vmul.f32 %v1057_v15, %v414_v23  ;;  %p930_p3 = por %p929_p2, %p928_p1 }
 0x19e   :  { %v364_v30 = vpop.f32.mrf.mxu1 }
 0x19f   :  { %v417_v31 = vmax.f32 %v373_v28, 0.0  ;;  %v365_v32 = vadd.f32 %v1051_v11, %v364_v30  ;;  %456 = vadd.xlane.f32.xlu1 %v437_v29  ;;  %v435_v33 = vmul.f32 %v1057_v15, %v412_v27  ;;  %p931_p4 = pnand %p930_p3, %p924_p0 }
 0x1a0   :  { %v816_v34 = vpop.f32.mrf.mxu1 }
 0x1a1   :  { %v376_v35 = vadd.f32 %v816_v34, %v1051_v11  ;;  %452 = vadd.xlane.f32.xlu0 %v435_v33  ;;  %v415_v37 = vmax.f32 %v365_v32, 0.0  ;;  %v440_v40 = vmul.f32 %v1057_v15, %v417_v31 }
 0x1a2   :  { %v367_v36 = vpop.f32.mrf.mxu1 }
 0x1a3   :  { %v418_v38 = vmax.f32 %v376_v35, 0.0  ;;  %v368_v39 = vadd.f32 %v1051_v11, %v367_v36  ;;  %v438_v48 = vmul.f32 %v1057_v15, %v415_v37 }
 0x1a4   :  { %v819_v41 = vpop.f32.mrf.mxu1 }
 0x1a5   :  { %v416_v42 = vmax.f32 %v368_v39, 0.0  ;;  %v389_v43 = vadd.f32 %v819_v41, %v1051_v11  ;;  %462 = vadd.xlane.f32.xlu0 %v440_v40  ;;  %v441_v44 = vmul.f32 %v1057_v15, %v418_v38 }
 0x1a6   :  { %v380_v45 = vpop.f32.mrf.mxu1 }
 0x1a7   :  { %v421_v46 = vmax.f32 %v389_v43, 0.0  ;;  %v381_v47 = vadd.f32 %v1051_v11, %v380_v45  ;;  %464 = vadd.xlane.f32.xlu1 %v441_v44  ;;  %v439_v51 = vmul.f32 %v1057_v15, %v416_v42 }
 0x1a8   :  { %v820_v49 = vpop.f32.mrf.mxu1 }
 0x1a9   :  { %v392_v50 = vadd.f32 %v820_v49, %v1051_v11  ;;  %458 = vadd.xlane.f32.xlu0 %v438_v48  ;;  %v419_v53 = vmax.f32 %v381_v47, 0.0  ;;  %v444_v56 = vmul.f32 %v1057_v15, %v421_v46 }
 0x1aa   :  { %v383_v52 = vpop.f32.mrf.mxu1 }
 0x1ab   :  { %v422_v54 = vmax.f32 %v392_v50, 0.0  ;;  %v384_v55 = vadd.f32 %v1051_v11, %v383_v52  ;;  %460 = vadd.xlane.f32.xlu1 %v439_v51  ;;  %v442_v63 = vmul.f32 %v1057_v15, %v419_v53 }
 0x1ac   :  { %v823_v57 = vpop.f32.mrf.mxu1 }
 0x1ad   :  { %v420_v58 = vmax.f32 %v384_v55, 0.0  ;;  %470 = vadd.xlane.f32.xlu0 %v444_v56  ;;  %v445_v59 = vmul.f32 %v1057_v15, %v422_v54  ;;  %v405_v61 = vadd.f32 %v823_v57, %v1051_v11 }
 0x1ae   :  { %v396_v60 = vpop.f32.mrf.mxu1 }
 0x1af   :  { %v397_v62 = vadd.f32 %v1051_v11, %v396_v60  ;;  %472 = vadd.xlane.f32.xlu1 %v445_v59  ;;  %v443_v2 = vmul.f32 %v1057_v15, %v420_v58  ;;  %v425_v4 = vmax.f32 %v405_v61, 0.0 }
 0x1b0   :  { %v824_v0 = vpop.f32.mrf.mxu1 }
 0x1b1   :  { %v423_v1 = vmax.f32 %v397_v62, 0.0  ;;  %466 = vadd.xlane.f32.xlu0 %v442_v63  ;;  %v408_v5 = vadd.f32 %v824_v0, %v1051_v11  ;;  %v448_v12 = vmul.f32 %v1057_v15, %v425_v4 }
 0x1b2   :  { %v399_v3 = vpop.f32.mrf.mxu1 }
 0x1b3   :  { %v400_v6 = vadd.f32 %v1051_v11, %v399_v3  ;;  %468 = vadd.xlane.f32.xlu1 %v443_v2  ;;  %v446_v7 = vmul.f32 %v1057_v15, %v423_v1  ;;  %v426_v9 = vmax.f32 %v408_v5, 0.0 }
 0x1b5   :  { %v424_v8 = vmax.f32 %v400_v6, 0.0  ;;  %474 = vadd.xlane.f32.xlu0 %v446_v7  ;;  %v449_v13 = vmul.f32 %v1057_v15, %v426_v9  ;;  %v596_v6 = vlaneseq }
 0x1b7   :  { %v447_v10 = vmul.f32 %v1057_v15, %v424_v8 }
 0x1b9   :  { %476 = vadd.xlane.f32.xlu1 %v447_v10  ;;  %478 = vadd.xlane.f32.xlu0 %v448_v12 }
 0x1bd   :  { %480 = vadd.xlane.f32.xlu1 %v449_v13 }
 0x224   :  { %v455_v11 = vpop.xlane.xlu1 %454 }
 0x225   :  { %v486_v16 = vadd.f32 %v1093_v14, %v455_v11 }
 0x226   :  { %v451_v17 = vpop.xlane.xlu0 %450 }
 0x227   :  { %v502_v18 = vsub.f32 0.0, %v486_v16  ;;  %v484_v19 = vadd.f32 %v1093_v14, %v451_v17 }
 0x228   :  { %v457_v20 = vpop.xlane.xlu1 %456 }
 0x229   :  { %v520_v21 = vmul.f32 1.442695, %v502_v18  ;;  %v500_v22 = vsub.f32 0.0, %v484_v19  ;;  %v487_v23 = vadd.f32 %v1093_v14, %v457_v20  ;;  %v1110_v19 = vand.u32 127, %v596_v6 }
 0x22a   :  { %v453_v24 = vpop.xlane.xlu0 %452 }
 0x22b   :  { %859 = vpow2.f32 %v520_v21  ;;  %v516_v15 = vmul.f32 1.442695, %v500_v22  ;;  %v503_v25 = vsub.f32 0.0, %v487_v23  ;;  %v485_v26 = vadd.f32 %v1093_v14, %v453_v24 }
 0x22d   :  { %861 = vpow2.f32 %v516_v15  ;;  %v522_v27 = vmul.f32 1.442695, %v503_v25  ;;  %v501_v28 = vsub.f32 0.0, %v485_v26  ;;  %v602_v15 = vadd.s32 4294967288, %v1110_v19 }
 0x22e   :  { %v463_v29 = vpop.xlane.xlu0 %462 }
 0x22f   :  { %v518_v30 = vmul.f32 1.442695, %v501_v28  ;;  %v490_v31 = vadd.f32 %v1093_v14, %v463_v29  ;;  %863 = vpow2.f32 %v522_v27 }
 0x230   :  { %v465_v32 = vpop.xlane.xlu1 %464 }
 0x231   :  { %865 = vpow2.f32 %v518_v30  ;;  %v506_v33 = vsub.f32 0.0, %v490_v31  ;;  %v491_v34 = vadd.f32 %v1093_v14, %v465_v32  ;;  %v1114_v30 = vshrl.u32 %v596_v6, 7 }
 0x232   :  { %v459_v35 = vpop.xlane.xlu0 %458  ;;  %v609_v31 = vadd.s32 4294967280, %v1110_v19 }
 0x233   :  { %v528_v36 = vmul.f32 1.442695, %v506_v33  ;;  %v507_v37 = vsub.f32 0.0, %v491_v34  ;;  %v488_v38 = vadd.f32 %v1093_v14, %v459_v35 }
 0x234   :  { %v461_v39 = vpop.xlane.xlu1 %460 }
 0x235   :  { %867 = vpow2.f32 %v528_v36  ;;  %v504_v40 = vsub.f32 0.0, %v488_v38  ;;  %v489_v41 = vadd.f32 %v1093_v14, %v461_v39  ;;  %v530_v42 = vmul.f32 1.442695, %v507_v37 }
 0x236   :  { %v471_v43 = vpop.xlane.xlu0 %470  ;;  %v605_v37 = vsub.s32 %v602_v15, %v1114_v30  ;;  %v600_v39 = vsub.s32 %v1110_v19, %v1114_v30 }
 0x237   :  { %v524_v44 = vmul.f32 1.442695, %v504_v40  ;;  %v505_v45 = vsub.f32 0.0, %v489_v41  ;;  %v494_v46 = vadd.f32 %v1093_v14, %v471_v43  ;;  %v616_v41 = vadd.s32 4294967272, %v1110_v19 }
 0x238   :  { %v860_v47 = vpop.eup %859  ;;  %v473_v48 = vpop.xlane.xlu1 %472 }
 0x239   :  { %v550_v49 = vadd.f32 1.0, %v860_v47  ;;  %869 = vpow2.f32 %v524_v44  ;;  %v526_v50 = vmul.f32 1.442695, %v505_v45  ;;  %v510_v51 = vsub.f32 0.0, %v494_v46 }
 0x23a   :  { %v862_v52 = vpop.eup %861  ;;  %871 = vpow2.f32 %v530_v42  ;;  %v495_v53 = vadd.f32 %v1093_v14, %v473_v48  ;;  %v467_v54 = vpop.xlane.xlu0 %466  ;;  %v612_v44 = vsub.s32 %v609_v31, %v1114_v30  ;;  %v623_v47 = vadd.s32 4294967264, %v1110_v19 }
 0x23b   :  { %v548_v55 = vadd.f32 1.0, %v862_v52  ;;  %v536_v56 = vmul.f32 1.442695, %v510_v51  ;;  %v492_v57 = vadd.f32 %v1093_v14, %v467_v54  ;;  %873 = vpow2.f32 %v526_v50 }
 0x23c   :  { %v511_v58 = vsub.f32 0.0, %v495_v53  ;;  %v469_v59 = vpop.xlane.xlu1 %468  ;;  %v864_v60 = vpop.eup %863  ;;  %875 = vrcp.f32 %v550_v49  ;;  %v619_v51 = vsub.s32 %v616_v41, %v1114_v30 }
 0x23d   :  { %v508_v61 = vsub.f32 0.0, %v492_v57  ;;  %v493_v62 = vadd.f32 %v1093_v14, %v469_v59  ;;  %877 = vpow2.f32 %v536_v56  ;;  %v551_v7 = vadd.f32 1.0, %v864_v60 }
 0x23e   :  { %v866_v63 = vpop.eup %865  ;;  %v538_v0 = vmul.f32 1.442695, %v511_v58  ;;  %v475_v1 = vpop.xlane.xlu0 %474  ;;  %879 = vrcp.f32 %v548_v55  ;;  %v630_v56 = vadd.s32 4294967256, %v1110_v19  ;;  %v626_v59 = vsub.s32 %v623_v47, %v1114_v30 }
 0x23f   :  { %v549_v2 = vadd.f32 1.0, %v866_v63  ;;  %v532_v3 = vmul.f32 1.442695, %v508_v61  ;;  %v509_v4 = vsub.f32 0.0, %v493_v62  ;;  %v496_v5 = vadd.f32 %v1093_v14, %v475_v1 }
 0x240   :  { %881 = vpow2.f32 %v538_v0  ;;  %v637_v60 = vadd.s32 4294967248, %v1110_v19 }
 0x241   :  { %883 = vrcp.f32 %v549_v2  ;;  %v534_v8 = vmul.f32 1.442695, %v509_v4  ;;  %v512_v10 = vsub.f32 0.0, %v496_v5  ;;  %v633_v2 = vsub.s32 %v630_v56, %v1114_v30 }
 0x242   :  { %v868_v9 = vpop.eup %867  ;;  %885 = vpow2.f32 %v532_v3  ;;  %v477_v12 = vpop.xlane.xlu1 %476  ;;  %v644_v4 = vadd.s32 4294967240, %v1110_v19 }
 0x243   :  { %v479_v13 = vpop.xlane.xlu0 %478  ;;  %887 = vpow2.f32 %v534_v8  ;;  %v497_v11 = vadd.f32 %v1093_v14, %v477_v12  ;;  %v554_v17 = vadd.f32 1.0, %v868_v9  ;;  %v540_v18 = vmul.f32 1.442695, %v512_v10 }
 0x244   :  { %v498_v16 = vadd.f32 %v1093_v14, %v479_v13  ;;  %889 = vrcp.f32 %v551_v7  ;;  %v640_v7 = vsub.s32 %v637_v60, %v1114_v30  ;;  %v651_v9 = vadd.s32 4294967232, %v1110_v19 }
 0x245   :  { %v513_v20 = vsub.f32 0.0, %v497_v11  ;;  %891 = vpow2.f32 %v540_v18  ;;  %v665_v18 = vadd.s32 4294967216, %v1110_v19 }
 0x246   :  { %v514_v21 = vsub.f32 0.0, %v498_v16  ;;  %v870_v22 = vpop.eup %869  ;;  %v481_v23 = vpop.xlane.xlu1 %480  ;;  %893 = vrcp.f32 %v554_v17  ;;  %v658_v16 = vadd.s32 4294967224, %v1110_v19 }
 0x247   :  { %v872_v24 = vpop.eup %871  ;;  %v552_v25 = vadd.f32 1.0, %v870_v22  ;;  %v542_v26 = vmul.f32 1.442695, %v513_v20  ;;  %v499_v28 = vadd.f32 %v1093_v14, %v481_v23  ;;  %v668_v31 = vsub.s32 %v665_v18, %v1114_v30 }
 0x248   :  { %v544_v27 = vmul.f32 1.442695, %v514_v21  ;;  %v874_v29 = vpop.eup %873  ;;  %v555_v33 = vadd.f32 1.0, %v872_v24  ;;  %v647_v21 = vsub.s32 %v644_v4, %v1114_v30  ;;  %v654_v24 = vsub.s32 %v651_v9, %v1114_v30 }
 0x249   :  { %895 = vrcp.f32 %v552_v25  ;;  %v876_v32 = vpop.eup %875  ;;  %v553_v34 = vadd.f32 1.0, %v874_v29  ;;  %v515_v35 = vsub.f32 0.0, %v499_v28 }
 0x24a   :  { %897 = vpow2.f32 %v542_v26  ;;  %v878_v36 = vpop.eup %877  ;;  %v613_v58 = vrot.slane %v876_v32, %v612_v44  ;;  %v661_v26 = vsub.s32 %v658_v16, %v1114_v30  ;;  %v679_v32 = vadd.s32 4294967200, %v1110_v19 }
 0x24b   :  { %899 = vpow2.f32 %v544_v27  ;;  %v880_v38 = vpop.eup %879  ;;  %v546_v14 = vmul.f32 1.442695, %v515_v35  ;;  %v558_v42 = vadd.f32 1.0, %v878_v36  ;;  %v672_v27 = vadd.s32 4294967208, %v1110_v19 }
 0x24c   :  { %901 = vrcp.f32 %v553_v34  ;;  %v601_v49 = vrot.slane %v880_v38, %v600_v39  ;;  %v693_v44 = vadd.s32 4294967184, %v1110_v19 }
 0x24d   :  { %v882_v40 = vpop.eup %881  ;;  %903 = vrcp.f32 %v555_v33 }
 0x24e   :  { %v884_v43 = vpop.eup %883  ;;  %905 = vpow2.f32 %v546_v14  ;;  %v559_v52 = vadd.f32 1.0, %v882_v40  ;;  %v675_v14 = vsub.s32 %v672_v27, %v1114_v30 }
 0x24f   :  { %v886_v45 = vpop.eup %885  ;;  %v606_v46 = vrot.slane %v884_v43, %v605_v37  ;;  %907 = vrcp.f32 %v558_v42  ;;  %v686_v37 = vadd.s32 4294967192, %v1110_v19  ;;  %v682_v43 = vsub.s32 %v679_v32, %v1114_v30 }
 0x250   :  { %v888_v48 = vpop.eup %887  ;;  %v556_v50 = vadd.f32 1.0, %v886_v45 }
 0x251   :  { %v557_v53 = vadd.f32 1.0, %v888_v48  ;;  %v890_v54 = vpop.eup %889  ;;  %v608_v55 = vsel %vm607_vm2, %v606_v46, %v601_v49  ;;  %v689_v48 = vsub.s32 %v686_v37, %v1114_v30 }
 0x252   :  { %909 = vrcp.f32 %v556_v50  ;;  %v892_v57 = vpop.eup %891  ;;  %v615_v63 = vsel %vm614_vm3, %v613_v58, %v608_v55  ;;  %v620_v1 = vrot.slane %v890_v54, %v619_v51  ;;  %v700_v50 = vadd.s32 4294967176, %v1110_v19 }
 0x253   :  { %911 = vrcp.f32 %v557_v53  ;;  %v560_v61 = vadd.f32 1.0, %v892_v57  ;;  %v894_v62 = vpop.eup %893 }
 0x254   :  { %913 = vrcp.f32 %v559_v52  ;;  %v622_v8 = vsel %vm621_vm4, %v620_v1, %v615_v63  ;;  %v641_v23 = vrot.slane %v894_v62, %v640_v7  ;;  %v696_v52 = vsub.s32 %v693_v44, %v1114_v30 }
 0x255   :  { %915 = vrcp.f32 %v560_v61  ;;  %v703_v57 = vsub.s32 %v700_v50, %v1114_v30 }
 0x256   :  { %v896_v0 = vpop.eup %895 }
 0x257   :  { %v898_v3 = vpop.eup %897  ;;  %v627_v5 = vrot.slane %v896_v0, %v626_v59 }
 0x258   :  { %v900_v6 = vpop.eup %899  ;;  %v561_v10 = vadd.f32 1.0, %v898_v3 }
 0x259   :  { %v902_v12 = vpop.eup %901  ;;  %v629_v13 = vsel %vm628_vm5, %v627_v5, %v622_v8  ;;  %v562_v11 = vadd.f32 1.0, %v900_v6 }
 0x25a   :  { %v634_v17 = vrot.slane %v902_v12, %v633_v2  ;;  %917 = vrcp.f32 %v561_v10  ;;  %v904_v20 = vpop.eup %903 }
 0x25b   :  { %919 = vrcp.f32 %v562_v11  ;;  %v906_v22 = vpop.eup %905  ;;  %v648_v34 = vrot.slane %v904_v20, %v647_v21 }
 0x25c   :  { %v636_v15 = vsel %vm635_vm6, %v634_v17, %v629_v13  ;;  %v563_v25 = vadd.f32 1.0, %v906_v22  ;;  %v908_v28 = vpop.eup %907 }
 0x25d   :  { %v643_v29 = vsel %vm642_vm7, %v641_v23, %v636_v15  ;;  %v669_v42 = vrot.slane %v908_v28, %v668_v31 }
 0x25e   :  { %921 = vrcp.f32 %v563_v25  ;;  %v650_v38 = vsel %vm649_vm8, %v648_v34, %v643_v29 }
 0x25f   :  { %v910_v33 = vpop.eup %909 }
 0x260   :  { %v912_v35 = vpop.eup %911  ;;  %v655_v36 = vrot.slane %v910_v33, %v654_v24 }
 0x261   :  { %v662_v39 = vrot.slane %v912_v35, %v661_v26  ;;  %v914_v40 = vpop.eup %913 }
 0x262   :  { %v657_v41 = vsel %vm656_vm9, %v655_v36, %v650_v38  ;;  %v916_v45 = vpop.eup %915  ;;  %v676_v49 = vrot.slane %v914_v40, %v675_v14 }
 0x263   :  { %v664_v46 = vsel %vm663_vm10, %v662_v39, %v657_v41  ;;  %v683_v51 = vrot.slane %v916_v45, %v682_v43 }
 0x264   :  { %v671_v47 = vsel %vm670_vm11, %v669_v42, %v664_v46 }
 0x265   :  { %v678_v54 = vsel %vm677_vm12, %v676_v49, %v671_v47 }
 0x266   :  { %v685_v58 = vsel %vm684_vm13, %v683_v51, %v678_v54 }
 0x267   :  { %v918_v53 = vpop.eup %917 }
 0x268   :  { %v920_v55 = vpop.eup %919  ;;  %v690_v56 = vrot.slane %v918_v53, %v689_v48 }
 0x269   :  { %v697_v59 = vrot.slane %v920_v55, %v696_v52 }
 0x26a   :  { %v692_v60 = vsel %vm691_vm14, %v690_v56, %v685_v58 }
 0x26b   :  { %v922_v61 = vpop.eup %921  ;;  %v699_v62 = vsel %vm698_vm15, %v697_v59, %v692_v60 }
 0x26c   :  { %v704_v19 = vrot.slane %v922_v61, %v703_v57 }
 0x26e   :  { %v706_v63 = vsel %vm705_vm0, %v704_v19, %v699_v62 }
 0x26f   :  { %708 = vst [vmem:[#allocation3] sm:$0x1] %v706_v63 }
 0x270   :  { %934 = shalt.err (!%p931_p4)
}
 0x271   :  { %718 = dma.vmem_to_hbm [thread:$0]  %s716_s13, 16, %s1157_s7, [#allocation4]  }
 0x272   :  { %943 = dma.done.wait [#allocation4], 16  }
 0x273   :  { %944 = vsyncadd [#allocation4], 4294967280 }
 0x274   :  { %722 = vsyncpa [#allocation4], 1 }

</bundles_post_ra>
